<compile_context>
chip_gen: v7x
topology: tpu7x:2x2x1
jax: 0.10.0
libtpu: 0.0.40
codegen_flags: <defaults>
</compile_context>

<pallas_src>
import functools

import jax
import jax.numpy as jnp
from jax.experimental import pallas as pl
from jax.experimental.pallas import tpu as pltpu


def _lsgan_sum_kernel(w_ref, bm1_ref, x_ref, out_ref, acc_ref, *, C):
    """One grid step: one (C, S, 128) spatial tile of one batch element.

    w_ref:   SMEM (C,)  f32  -- disc 1x1-conv weights (scalar prefetch).
    bm1_ref: SMEM (1,)  f32  -- disc bias - 1.0       (scalar prefetch).
    x_ref:   VMEM (C, S, 128) fake activations tile (native dtype).
    out_ref: VMEM (S, 128) f32 per-batch partial-sum slab.
    acc_ref: VMEM (S, 128) f32 running accumulator across spatial tiles.
    """
    j = pl.program_id(1)

    @pl.when(j == 0)
    def _():
        acc_ref[...] = jnp.zeros_like(acc_ref)

    # 1x1-conv discriminator: pred - 1 = sum_c w[c] * x[c] + (bias - 1).
    # C is tiny and static -> unrolled scalar-broadcast FMAs on the VPU.
    pred_m1 = x_ref[0].astype(jnp.float32) * w_ref[0] + bm1_ref[0]
    for c in range(1, C):
        pred_m1 = pred_m1 + x_ref[c].astype(jnp.float32) * w_ref[c]

    acc_ref[...] += pred_m1 * pred_m1

    @pl.when(j == pl.num_programs(1) - 1)
    def _():
        out_ref[...] = acc_ref[...]


def generator_lsgan_loss(fake_nchw, disc_w, disc_b, *, target_block_bytes=1 << 20):
    """fake_nchw: [B, C, H, W]; disc_w: [C]; disc_b: scalar. Returns scalar loss."""
    B, C, H, W = fake_nchw.shape
    HW = H * W
    LANES = 128

    # Free reshape of contiguous NCHW memory; no transpose, no dtype cast.
    x = fake_nchw.reshape(B, C, HW)

    # Spatial tiling: S rows of 128 lanes, aiming for ~1 MiB per streamed block.
    itemsize = jnp.dtype(fake_nchw.dtype).itemsize
    R = pl.cdiv(HW, LANES)                       # number of 128-lane chunks
    s_target = (target_block_bytes // (C * LANES * itemsize)) // 8 * 8
    s_target = int(max(8, min(s_target, 2048)))
    if R <= s_target:
        S = R                                    # one spatial tile per batch
        R_pad = R
    else:
        S = s_target
        R_pad = pl.cdiv(R, S) * S

    HW_pad = R_pad * LANES
    n_pad = HW_pad - HW
    if n_pad:
        x = jnp.pad(x, ((0, 0), (0, 0), (0, n_pad)))
    x4 = x.reshape(B, C, R_pad, LANES)

    # Tiny disc params -> SMEM via scalar prefetch; fold (bias - 1) once.
    w_s = disc_w.reshape(C).astype(jnp.float32)
    bm1 = (jnp.reshape(disc_b, ()) - 1.0).astype(jnp.float32)
    bm1_s = bm1.reshape(1)

    grid = (B, R_pad // S)
    kernel = functools.partial(_lsgan_sum_kernel, C=C)

    partials = pl.pallas_call(
        kernel,
        out_shape=jax.ShapeDtypeStruct((B, S, LANES), jnp.float32),
        grid_spec=pltpu.PrefetchScalarGridSpec(
            num_scalar_prefetch=2,
            grid=grid,
            in_specs=[
                pl.BlockSpec((None, C, S, LANES),
                             lambda b, j, w_sm, b_sm: (b, 0, j, 0)),
            ],
            out_specs=pl.BlockSpec((None, S, LANES),
                                   lambda b, j, w_sm, b_sm: (b, 0, 0)),
            scratch_shapes=[pltpu.VMEM((S, LANES), jnp.float32)],
        ),
        compiler_params=pltpu.CompilerParams(
            dimension_semantics=("parallel", "arbitrary"),
        ),
    )(w_s, bm1_s, x4)

    total = jnp.sum(partials)
    if n_pad:
        # Padded spatial positions are zero-filled -> each contributes (b-1)^2.
        total = total - (B * n_pad) * (bm1 * bm1)
    return total / (B * HW)


def generator_lsgan_loss_ref(fake_nchw, disc_w, disc_b):
    """Pure-JAX reference of GeneratorLoss.forward with the same synthetic disc."""
    x = jnp.transpose(fake_nchw, (0, 2, 3, 1)).astype(jnp.float32)
    pred = jnp.einsum("bhwc,c->bhw", x, disc_w.astype(jnp.float32)) + disc_b
    return jnp.mean((pred - 1.0) ** 2)


if __name__ == "__main__":
    key = jax.random.PRNGKey(0)
    k_fake, k_w, k_b = jax.random.split(key, 3)

    B, C, H, W = 2, 4, 16, 16
    fake = jax.random.normal(k_fake, (B, C, H, W), dtype=jnp.float32)

    # Deterministic synthetic discriminator parameters (1x1 conv: C -> 1).
    disc_w = jax.random.normal(k_w, (C,), dtype=jnp.float32) * 0.1
    disc_b = jax.random.normal(k_b, (), dtype=jnp.float32) * 0.1

    loss = generator_lsgan_loss(fake, disc_w, disc_b)
    loss = jax.block_until_ready(loss)

    ref = generator_lsgan_loss_ref(fake, disc_w, disc_b)
    assert jnp.allclose(loss, ref, rtol=1e-5, atol=1e-5), (loss, ref)

    print("KERNEL_OK")
</pallas_src>

<mosaic_0001>
module attributes {stable_mosaic.version = 11 : i64} {
  func.func @_lsgan_sum_kernel(%arg0: i32, %arg1: i32, %arg2: memref<4xf32, #tpu.memory_space<smem>>, %arg3: memref<1xf32, #tpu.memory_space<smem>>, %arg4: memref<1x4x2x128xf32, #tpu.memory_space<vmem>>, %arg5: memref<1x2x128xf32, #tpu.memory_space<vmem>>, %arg6: memref<2x128xf32, #tpu.memory_space<vmem>>) attributes {dimension_semantics = [#tpu.dimension_semantics<parallel>, #tpu.dimension_semantics<arbitrary>], iteration_bounds = array<i64: 2, 1>, scalar_prefetch = 2 : i64, scratch_operands = 1 : i64, tpu.core_type = #tpu.core_type<tc>, window_params = [{transform_indices = @transform_0, window_bounds = array<i64: 1, 4, 2, 128>}, {transform_indices = @transform_1, window_bounds = array<i64: 1, 2, 128>}]} {
    %c0_i32 = arith.constant 0 : i32
    %0 = arith.cmpi eq, %arg1, %c0_i32 : i32
    %1 = arith.extui %0 : i1 to i32
    %c0_i32_0 = arith.constant 0 : i32
    %2 = arith.cmpi ne, %1, %c0_i32_0 : i32
    scf.if %2 {
      %cst = arith.constant 0.000000e+00 : f32
      %36 = vector.broadcast %cst : f32 to vector<2x128xf32>
      %c0_24 = arith.constant 0 : index
      %c0_25 = arith.constant 0 : index
      %37 = vector.load %arg6[%c0_24, %c0_25] : memref<2x128xf32, #tpu.memory_space<vmem>>, vector<2x128xf32>
      tpu.vector_store %arg6[%c0_24, %c0_25], %36 {strides = array<i32>} : memref<2x128xf32, #tpu.memory_space<vmem>>, vector<2x128xf32>,
    } else {
    }
    %c0 = arith.constant 0 : index
    %c0_1 = arith.constant 0 : index
    %c0_2 = arith.constant 0 : index
    %c0_3 = arith.constant 0 : index
    %3 = vector.load %arg4[%c0, %c0_1, %c0_2, %c0_3] : memref<1x4x2x128xf32, #tpu.memory_space<vmem>>, vector<1x1x2x128xf32>
    %4 = vector.shape_cast %3 : vector<1x1x2x128xf32> to vector<2x128xf32>
    %c0_4 = arith.constant 0 : index
    %5 = memref.load %arg2[%c0_4] : memref<4xf32, #tpu.memory_space<smem>>
    %6 = vector.broadcast %5 : f32 to vector<2x128xf32>
    %7 = arith.mulf %4, %6 : vector<2x128xf32>
    %c0_5 = arith.constant 0 : index
    %8 = memref.load %arg3[%c0_5] : memref<1xf32, #tpu.memory_space<smem>>
    %9 = vector.broadcast %8 : f32 to vector<2x128xf32>
    %10 = arith.addf %7, %9 : vector<2x128xf32>
    %c0_6 = arith.constant 0 : index
    %c1 = arith.constant 1 : index
    %c0_7 = arith.constant 0 : index
    %c0_8 = arith.constant 0 : index
    %11 = vector.load %arg4[%c0_6, %c1, %c0_7, %c0_8] : memref<1x4x2x128xf32, #tpu.memory_space<vmem>>, vector<1x1x2x128xf32>
    %12 = vector.shape_cast %11 : vector<1x1x2x128xf32> to vector<2x128xf32>
    %c1_9 = arith.constant 1 : index
    %13 = memref.load %arg2[%c1_9] : memref<4xf32, #tpu.memory_space<smem>>
    %14 = vector.broadcast %13 : f32 to vector<2x128xf32>
    %15 = arith.mulf %12, %14 : vector<2x128xf32>
    %16 = arith.addf %10, %15 : vector<2x128xf32>
    %c0_10 = arith.constant 0 : index
    %c2 = arith.constant 2 : index
    %c0_11 = arith.constant 0 : index
    %c0_12 = arith.constant 0 : index
    %17 = vector.load %arg4[%c0_10, %c2, %c0_11, %c0_12] : memref<1x4x2x128xf32, #tpu.memory_space<vmem>>, vector<1x1x2x128xf32>
    %18 = vector.shape_cast %17 : vector<1x1x2x128xf32> to vector<2x128xf32>
    %c2_13 = arith.constant 2 : index
    %19 = memref.load %arg2[%c2_13] : memref<4xf32, #tpu.memory_space<smem>>
    %20 = vector.broadcast %19 : f32 to vector<2x128xf32>
    %21 = arith.mulf %18, %20 : vector<2x128xf32>
    %22 = arith.addf %16, %21 : vector<2x128xf32>
    %c0_14 = arith.constant 0 : index
    %c3 = arith.constant 3 : index
    %c0_15 = arith.constant 0 : index
    %c0_16 = arith.constant 0 : index
    %23 = vector.load %arg4[%c0_14, %c3, %c0_15, %c0_16] : memref<1x4x2x128xf32, #tpu.memory_space<vmem>>, vector<1x1x2x128xf32>
    %24 = vector.shape_cast %23 : vector<1x1x2x128xf32> to vector<2x128xf32>
    %c3_17 = arith.constant 3 : index
    %25 = memref.load %arg2[%c3_17] : memref<4xf32, #tpu.memory_space<smem>>
    %26 = vector.broadcast %25 : f32 to vector<2x128xf32>
    %27 = arith.mulf %24, %26 : vector<2x128xf32>
    %28 = arith.addf %22, %27 : vector<2x128xf32>
    %c0_18 = arith.constant 0 : index
    %c0_19 = arith.constant 0 : index
    %29 = vector.load %arg6[%c0_18, %c0_19] : memref<2x128xf32, #tpu.memory_space<vmem>>, vector<2x128xf32>
    %30 = arith.mulf %28, %28 : vector<2x128xf32>
    %31 = arith.addf %29, %30 : vector<2x128xf32>
    %c0_20 = arith.constant 0 : index
    %c0_21 = arith.constant 0 : index
    %32 = vector.load %arg6[%c0_20, %c0_21] : memref<2x128xf32, #tpu.memory_space<vmem>>, vector<2x128xf32>
    tpu.vector_store %arg6[%c0_20, %c0_21], %31 {strides = array<i32>} : memref<2x128xf32, #tpu.memory_space<vmem>>, vector<2x128xf32>,
    %c0_i32_22 = arith.constant 0 : i32
    %33 = arith.cmpi eq, %arg1, %c0_i32_22 : i32
    %34 = arith.extui %33 : i1 to i32
    %c0_i32_23 = arith.constant 0 : i32
    %35 = arith.cmpi ne, %34, %c0_i32_23 : i32
    scf.if %35 {
      %c0_24 = arith.constant 0 : index
      %c0_25 = arith.constant 0 : index
      %36 = vector.load %arg6[%c0_24, %c0_25] : memref<2x128xf32, #tpu.memory_space<vmem>>, vector<2x128xf32>
      %c0_26 = arith.constant 0 : index
      %c0_27 = arith.constant 0 : index
      %c0_28 = arith.constant 0 : index
      %37 = vector.load %arg5[%c0_26, %c0_27, %c0_28] : memref<1x2x128xf32, #tpu.memory_space<vmem>>, vector<1x2x128xf32>
      %38 = vector.shape_cast %37 : vector<1x2x128xf32> to vector<2x128xf32>
      %39 = vector.shape_cast %36 : vector<2x128xf32> to vector<1x2x128xf32>
      tpu.vector_store %arg5[%c0_26, %c0_27, %c0_28], %39 {strides = array<i32>} : memref<1x2x128xf32, #tpu.memory_space<vmem>>, vector<1x2x128xf32>,
    } else {
    }
    return
  }
  func.func @transform_0(%arg0: i32, %arg1: i32, %arg2: memref<4xf32, #tpu.memory_space<smem>>, %arg3: memref<1xf32, #tpu.memory_space<smem>>) -> (i32, i32, i32, i32) {
    %c0_i32 = arith.constant 0 : i32
    %c0_i32_0 = arith.constant 0 : i32
    %c0_i32_1 = arith.constant 0 : i32
    return %arg0, %c0_i32, %arg1, %c0_i32_0 : i32, i32, i32, i32
  }
  func.func @transform_1(%arg0: i32, %arg1: i32, %arg2: memref<4xf32, #tpu.memory_space<smem>>, %arg3: memref<1xf32, #tpu.memory_space<smem>>) -> (i32, i32, i32) {
    %c0_i32 = arith.constant 0 : i32
    %c0_i32_0 = arith.constant 0 : i32
    %c0_i32_1 = arith.constant 0 : i32
    return %arg0, %c0_i32, %c0_i32_0 : i32, i32, i32
  }
}

</mosaic_0001>

<bundles_post_ra>
// kernel: tpu_custom_call.1
= control target key start
LH: loop header
LB: loop body
LE: loop exit
PB: predicated region body
PF: predicated region fallthrough
CT: control target
= control target key end

     0   :  { %s713_s0 = inlined_call_operand.vmem [shape: f32[4], index: 0, kind: input, shape index: {}]   ;;  %s714_s1 = inlined_call_operand.<no memory space> [shape: f32[1], index: 1, kind: input, shape index: {}]   ;;  %s715_s2 = inlined_call_operand.hbm [shape: f32[2,4,2,128], index: 2, kind: input, shape index: {}]   ;;  %s716_s3 = inlined_call_operand.hbm [shape: f32[2,2,128], index: 3, kind: output, shape index: {}]  }
   0x1   :  { %s8_s14 = sshll.u32 %s713_s0, 4  ;;  %12 = sst [smem:[#allocation5]] %s714_s1  ;;  %s9_s14 = int_to_ptr.vmem [resolvable:$true] %s8_s14 }
   0x2   :  { %s379_s17 = scalar_lea.vmem %s9_s14, 16  ;;  %p384_p1 = scmp.lt.s32.totalorder %s9_s14, %s9_s14 }
   0x3   :  { %p380_p0 = scmp.ne.s32.totalorder %s9_s14, %s379_s17  ;;  %p385_p2 = scmp.lt.s32.totalorder %s379_s17, %s379_s17 }
   0x5   :  { %p386_p3 = por %p385_p2, %p384_p1 }
   0x7   :  { %p387_p4 = pnand %p386_p3, %p380_p0 }
   0x9   :  { %390 = shalt.err (!%p387_p4)  }
   0xa   :  { %s507_s18 = smov [#allocation4]  }
   0xb   :  { %11 = dma.vmem_to_smem %s9_s14, 16, %s507_s18, [#allocation3] }
   0xc   :  { %473 = dma.done.wait [#allocation3], 16 }
   0xd   :  { %474 = vsyncadd [#allocation3], 4294967280 }
   0xe   :  { %14 = sfence }
   0xf   :  { %15 = vsyncpa [#allocation7], 0 }
  0x10   :  { %17 = vsyncpa [#allocation7 + $0x1], 0 }
  0x11   :  { %18 = vsyncpa [#allocation8], 0 }
  0x12   :  { %20 = vsyncpa [#allocation8 + $0x1], 0  ;;  %s539_s0 = smov 0   ;;  %s541_s1 = smov 0  }
  0x13   :  { %s543_s19 = smov 0   ;;  %s545_s20 = smov 0  }
  0x14   :  { %s547_s21 = smov 0   ;;  %s549_s22 = smov 0  }
  0x15 LB: > { %s292_s23 = sadd.s32 4294967295, %s505_s22   ;;  %s293_s24 = sadd.s32 4294967294, %s505_s22   ;;  %s505_s22 = sphi %s549_s22, %s26_s22   ;;  %s501_s21 = sphi %s547_s21, %s731_s21   ;;  %s497_s20 = sphi %s545_s20, %s730_s20   ;;  %s493_s19 = sphi %s543_s19, %s729_s19   ;;  %s489_s1 = sphi %s541_s1, %s728_s1   ;;  %s485_s0 = sphi %s539_s0, %s727_s0  }
  0x16   : > { %s38_s25 = sadd.s32 1, %s501_s21  ;;  %s47_s26 = sadd.s32 1, %s493_s19 }
  0x17   : > { %p40_p5 = scmp.ge.s32.totalorder %s38_s25, 2  ;;  %p54_p6 = scmp.ne.s32.totalorder %s493_s19, %s489_s1 }
  0x18   : > { %p55_p7 = scmp.eq.s32.totalorder %s505_s22, 0  ;;  %p60_p8 = scmp.ne.s32.totalorder %s489_s1, %s485_s0 }
  0x19   : > { %s733_s25 = smov (%p40_p5, %s38_s25), 0  ;;  %p61_p10 = scmp.eq.s32.totalorder %s292_s23, 0 }
  0x1a   : > { %p580_p9 = por %p55_p7, %p54_p6  ;;  %s42_s28 = ssub.s32 %s501_s21, %s733_s25 }
  0x1b   : > { %p84_p11 = scmp.eq.s32.totalorder %s292_s23, 1  ;;  %p45_p12 = scmp.eq.s32.totalorder %s42_s28, 0 }
  0x1c   : > { %p586_p13 = por %p61_p10, %p60_p8  ;;  %p90_p1 = scmp.eq.s32.totalorder %s293_s24, 1 }
  0x1d   : > { %p590_p0 = por %p84_p11, %p54_p6  ;;  %p325_p4 = scmp.lt.s32.totalorder %s505_s22, 2 }
  0x1e   : > { %s595_s4 = scalar_select %p45_p12, %s493_s19, %s47_s26  }
  0x1f   : > { %s720_s30 = scalar_select %p590_p0, 1, 0 }
  0x20   : > { %p597_p2 = por %p90_p1, %p60_p8  ;;  %s110_s6 = sand.u32 1, %s493_s19  }
  0x21   : > { %s296_s7 = sshll.u32 %s110_s6, 3  ;;  %s312_s8 = sshll.u32 %s501_s21, 7 }
  0x22   : > { %s721_s5 = scalar_select %p597_p2, 1, 0 }
  0x23   : > { %s608_s11 = scalar_lea.hbm %s715_s2, %s312_s8  ;;  %s114_s12 = scalar_lea.vmem [#allocation6], %s296_s7 }
  0x24   : > { %s122_s13 = sshll.u32 %s114_s12, 4  ;;  %p614_p5 = pnand %p325_p4, %p580_p9  ;;  %s610_s13 = int_to_ptr.vmem [resolvable:$true] %s122_s13 }
  0x25   : > { %s619_s15 = scalar_lea.sflag [#allocation7], %s110_s6  ;;  %s391_s16 = scalar_lea.hbm %s608_s11, 128 }
  0x26   : > { %p392_p7 = scmp.ne.s32.totalorder %s608_s11, %s391_s16  ;;  %p393_p8 = pneg %p614_p5 }
  0x27   : > { %s396_s23 = scalar_lea.hbm %s715_s2, 256  ;;  %p397_p9 = scmp.lt.u32.totalorder %s608_s11, %s715_s2 }
  0x28   : > { %p394_p10 = pnand %p393_p8, %p392_p7  ;;  %p398_p12 = scmp.lt.u32.totalorder %s396_s23, %s391_s16 }
  0x29   : > { %p400_p4 = scmp.lt.u32.totalorder %s391_s16, %s608_s11 }
  0x2a   : > { %p395_p11 = pneg %p394_p10  ;;  %p399_p1 = por %p398_p12, %p397_p9 }
  0x2c   : > { %p401_p3 = por %p400_p4, %p399_p1 }
  0x2e   : > { %p402_p6 = pnand %p401_p3, %p395_p11 }
  0x30   : > { %405 = shalt.err (!%p402_p6)
}
  0x31   : > { %s406_s27 = scalar_lea.vmem %s610_s13, 128  ;;  %s508_s28 = smov [#allocation6]  }
  0x32   : > { %p407_p7 = scmp.ne.s32.totalorder %s610_s13, %s406_s27  ;;  %s411_s6 = sshll.u32 %s508_s28, 4  ;;  %s412_s6 = int_to_ptr.vmem [resolvable:$false] %s411_s6 }
  0x33   : > { %s413_s7 = scalar_lea.vmem %s412_s6, 256  ;;  %p414_p0 = scmp.lt.s32.totalorder %s610_s13, %s412_s6 }
  0x34   : > { %p409_p10 = pnand %p407_p7, %p393_p8  ;;  %p415_p9 = scmp.lt.s32.totalorder %s413_s7, %s406_s27 }
  0x36   : > { %p410_p2 = pneg %p409_p10  ;;  %p416_p12 = por %p415_p9, %p414_p0 }
  0x38   : > { %p417_p1 = pnand %p416_p12, %p410_p2 }
  0x3a   : > { %420 = shalt.err (!%p417_p1)
}
  0x3b   : > { %s509_s8 = smov 32   ;;  %s510_s9 = smov 2  }
  0x3c   : > { %320 = dma.hbm_to_vmem [thread:$0]  (!%p614_p5), %s608_s11, 128, %s610_s13, %s619_s15, %s509_s8, %s509_s8, %s510_s9  }
  0x3d   : > { %p130_p3 = scmp.lt.s32.totalorder %s505_s22, 3  ;;  %p723_p6 = scmp.ge.s32.totalorder %s505_s22, 1 }
  0x3f   : > { %p131_p8 = pnand %p723_p6, %p130_p3 }
  0x40   : > { %s651_s10 = sand.u32 (!%p131_p8), 1, %s489_s1  }
  0x41   : > { %134 = sbr.rel (%p131_p8) target bundleno = 116 (0x74), region = 24  ;;  %s300_s12 = sshll.u32 (!%p131_p8), %s651_s10, 3 }
  0x42   : > { %s137_s16 = scalar_lea.sflag (!%p131_p8), [#allocation7], %s651_s10  ;;  %s140_s17 = scalar_lea.vmem (!%p131_p8), [#allocation6], %s300_s12 }
  0x48   : > { %476 = dma.done.wait (%p586_p13), %s137_s16, 128  }
  0x49   : > { %478 = vsyncadd (%p586_p13), %s137_s16, 4294967168  ;;  %v511_v0 = vmov 0.0   ;;  %s165_s11 = sld [smem:[#allocation4]]  ;;  %s303_s14 = sld [smem:[#allocation4 + $0x1]]  ;;  %v164_v1 = vld [vmem:[%s140_s17] sm:$0x3] }
  0x4a   : > { %163 = vst [vmem:[#allocation2] sm:$0x3] %v511_v0  ;;  %s168_s13 = sld [smem:[#allocation5]]  ;;  %s305_s15 = sld [smem:[#allocation4 + $0x2]]  ;;  %v302_v4 = vld [vmem:[%s140_s17 + $0x2] sm:$0x3] }
  0x4b   : > { %s307_s18 = sld [smem:[#allocation4 + $0x3]]  ;;  %v304_v7 = vld [vmem:[%s140_s17 + $0x4] sm:$0x3]  ;;  %v306_v10 = vld [vmem:[%s140_s17 + $0x6] sm:$0x3]  ;;  %s301_s29 = sshll.u32 %s651_s10, 1 }
  0x4c   : > { %s158_s23 = scalar_lea.vmem [#allocation9], %s301_s29  ;;  %s309_s26 = sshll.u32 %s497_s20, 5 }
  0x4d   : > { %s212_s24 = sshll.u32 %s158_s23, 4  ;;  %s666_s6 = scalar_lea.hbm %s716_s3, %s309_s26  ;;  %s661_s24 = int_to_ptr.vmem [resolvable:$true] %s212_s24 }
  0x4e   : > { %s199_s7 = scalar_lea.sflag [#allocation8], %s651_s10  ;;  %s421_s8 = scalar_lea.vmem %s661_s24, 32 }
  0x4f   : > { %v166_v2 = vstv %s165_s11  ;;  %v174_v6 = vstv %s303_s14  ;;  %p422_p13 = scmp.ne.s32.totalorder %s661_s24, %s421_s8  ;;  %p724_p0 = scmp.ne.s32.totalorder %s720_s30, 0 }
  0x50   : > { %v169_v3 = vstv %s168_s13  ;;  %v167_v5 = vmul.f32 %v166_v2, %v164_v1  ;;  %v180_v8 = vstv %s305_s15  ;;  %v175_v9 = vmul.f32 %v302_v4, %v174_v6  ;;  %s512_s9 = smov [#allocation9]  }
  0x51   : > { %v186_v11 = vstv %s307_s18  ;;  %v181_v13 = vmul.f32 %v304_v7, %v180_v8  ;;  %v189_v18 = vld [vmem:[#allocation2] sm:$0x3]  ;;  %p423_p2 = pnand %p422_p13, %p724_p0  ;;  %s425_s20 = sshll.u32 %s512_s9, 4  ;;  %s426_s20 = int_to_ptr.vmem [resolvable:$false] %s425_s20 }
  0x52   : > { %v170_v12 = vadd.f32 %v169_v3, %v167_v5  ;;  %v187_v15 = vmul.f32 %v306_v10, %v186_v11  ;;  %s427_s12 = scalar_lea.vmem %s426_s20, 64  ;;  %p428_p11 = scmp.lt.s32.totalorder %s661_s24, %s426_s20 }
  0x53   : > { %p424_p5 = pneg %p423_p2  ;;  %p429_p4 = scmp.lt.s32.totalorder %s427_s12, %s421_s8 }
  0x54   : > { %v176_v14 = vadd.f32 %v175_v9, %v170_v12 }
  0x55   : > { %p430_p7 = por %p429_p4, %p428_p11 }
  0x56   : > { %v182_v16 = vadd.f32 %v181_v13, %v176_v14 }
  0x57   : > { %p431_p10 = pnand %p430_p7, %p424_p5 }
  0x58   : > { %v188_v17 = vadd.f32 %v187_v15, %v182_v16 }
  0x5a   : > { %v190_v19 = vmul.f32 %v188_v17, %v188_v17 }
  0x5c   : > { %v191_v20 = vadd.f32 %v190_v19, %v189_v18 }
  0x5e   : > { %192 = vst [vmem:[#allocation2] sm:$0x3] %v191_v20 }
  0x65   : > { %v196_v21 = vld [vmem:[#allocation2] sm:$0x3] }
  0x66   : > { %197 = vst [vmem:[%s158_s23] sm:$0x3] %v196_v21 }
  0x67   : > { %434 = shalt.err (!%p431_p10)
}
  0x68   : > { %s435_s10 = scalar_lea.hbm %s666_s6, 32  ;;  %s439_s11 = scalar_lea.hbm %s716_s3, 64 }
  0x69   : > { %p436_p9 = scmp.ne.s32.totalorder %s666_s6, %s435_s10  ;;  %p440_p3 = scmp.lt.u32.totalorder %s666_s6, %s716_s3 }
  0x6a   : > { %p441_p6 = scmp.lt.u32.totalorder %s439_s11, %s435_s10  ;;  %p443_p13 = scmp.lt.u32.totalorder %s435_s10, %s666_s6 }
  0x6b   : > { %p437_p12 = pnand %p436_p9, %p724_p0 }
  0x6c   : > { %p442_p8 = por %p441_p6, %p440_p3 }
  0x6d   : > { %p438_p1 = pneg %p437_p12 }
  0x6e   : > { %p444_p2 = por %p443_p13, %p442_p8 }
  0x70   : > { %p445_p5 = pnand %p444_p2, %p438_p1 }
  0x72   : > { %448 = shalt.err (!%p445_p5)
}
  0x73   : > { %315 = dma.vmem_to_hbm [thread:$0]  (%p724_p0), %s661_s24, 32, %s666_s6, %s199_s7  }
  0x74 PF: > { %s224_s15 = sand.u32 1, %s485_s0   ;;  %p725_p11 = scmp.ne.s32.totalorder %s721_s5, 0 }
  0x75   : > { %p726_p4 = scmp.ge.s32.totalorder %s505_s22, 2  ;;  %s225_s18 = scalar_lea.sflag [#allocation8], %s224_s15 }
  0x77   : > { %p322_p7 = pnand %p726_p4, %p725_p11 }
  0x79   : > { %480 = dma.done.wait (!%p322_p7), %s225_s18, 32  }
  0x7a   : > { %482 = vsyncadd (!%p322_p7), %s225_s18, 4294967264  ;;  %s26_s22 = sadd.s32 1, %s505_s22   ;;  %s727_s0 = smov %s489_s1 }
  0x7b   : > { %p23_p10 = scmp.ge.s32.totalorder %s26_s22, 4   ;;  %s728_s1 = smov %s493_s19 }
  0x7c   : > { %s729_s19 = smov %s595_s4  ;;  %s730_s20 = smov %s501_s21 }
  0x7d   : > { %s731_s21 = smov %s733_s25  ;;  %25 = sbr.rel (!%p23_p10) target bundleno = 21 (0x15), region = 80 }
  0x84   :  { %230 = vsyncpa [#allocation7], 1 }
  0x85   :  { %232 = vsyncpa [#allocation7 + $0x1], 1 }
  0x86   :  { %233 = vsyncpa [#allocation8], 1 }
  0x87   :  { %235 = vsyncpa [#allocation8 + $0x1], 1 }

</bundles_post_ra>
